<compile_context>
chip_gen: v7x
topology: tpu7x:2x2x1
jax: 0.10.0
libtpu: 0.0.40
codegen_flags: <defaults>
</compile_context>

<pallas_src>
import functools

import jax
import jax.numpy as jnp
from jax.experimental import pallas as pl
from jax.experimental.pallas import tpu as pltpu

OUT_LANES = 128  # lane-dense output slab width


# ----------------------------- Pallas kernel --------------------------------

def _predictor_concat_kernel(n_nodes, hidden_dim,
                             xt_ref, a_ref, p_ref,
                             w_in_ref, w_hh_ref, w_cat_ref, bias_ref, out_ref):
    """Packed-argument fused forward.

    xt_ref   : [N + Gp, input_dim]   bf16  row-stack of node features and task embeddings
    a_ref    : [N, N]                bf16  sym-normalized adjacency (with self loops)
    p_ref    : [Gp, N]               bf16  mean-pool matrix (zero rows for padding)
    w_in_ref : [input_dim, 2H]       bf16  column-concat [g_w1 | pj_w0]
    w_hh_ref : [4, H, H]             bf16  (g_w2, pj_w1, pj_w2, f_w1)
    w_cat_ref: [2H, H]               bf16  unsplit f_w0 (acts on the lane-concat)
    bias_ref : [9, H]                f32   rows 0-6: biases, row 7: f_w2 row, row 8: f_b2
    out_ref  : [Gp, OUT_LANES]       f32   sigmoid score broadcast across lanes
    """
    f32 = jnp.float32
    bf16 = jnp.bfloat16
    H = hidden_dim

    def l2norm(v):
        # F.normalize(v, p=2, dim=1): v / max(||v||, 1e-12)  (rsqrt on clamped sq-norm)
        sq = jnp.sum(v * v, axis=1, keepdims=True)
        return v * jax.lax.rsqrt(jnp.maximum(sq, 1e-24))

    a = a_ref[...]

    # --- fused K=input_dim input matmul: one MXU pass for both entry Linears ---
    xt = jnp.dot(xt_ref[...], w_in_ref[...], preferred_element_type=f32)  # [N+Gp, 2H]
    h = xt[:n_nodes, :H]          # x @ g_w1        (GNN path, pre-aggregation)
    t = xt[n_nodes:, H:]          # task @ pj_w0    (projector path, pre-bias)

    # --- GNN layer 1: GCNConv + ReLU (dropout = identity in eval) ---
    h = jnp.dot(a, h.astype(bf16), preferred_element_type=f32) + bias_ref[0:1, :]
    h = jnp.maximum(h, 0.0)

    # --- GNN layer 2: GCNConv (no activation on the last GNN layer) ---
    h = jnp.dot(h.astype(bf16), w_hh_ref[0], preferred_element_type=f32)
    h = jnp.dot(a, h.astype(bf16), preferred_element_type=f32) + bias_ref[1:2, :]

    # --- global_mean_pool + L2 normalize ---
    pooled = l2norm(jnp.dot(p_ref[...], h.astype(bf16), preferred_element_type=f32))

    # --- projector MLP on task embedding (ReLU on all but last layer) ---
    t = jnp.maximum(t + bias_ref[2:3, :], 0.0)
    t = jnp.dot(t.astype(bf16), w_hh_ref[1], preferred_element_type=f32) + bias_ref[3:4, :]
    t = jnp.maximum(t, 0.0)
    t = jnp.dot(t.astype(bf16), w_hh_ref[2], preferred_element_type=f32) + bias_ref[4:5, :]
    t = l2norm(t)

    # --- final MLP: concat realized as lane-concat + single K=2H matmul ---
    cat = jnp.concatenate([pooled.astype(bf16), t.astype(bf16)], axis=1)   # [Gp, 2H]
    e = jnp.dot(cat, w_cat_ref[...], preferred_element_type=f32) + bias_ref[5:6, :]
    e = jnp.maximum(e, 0.0)
    e = jnp.dot(e.astype(bf16), w_hh_ref[3], preferred_element_type=f32) + bias_ref[6:7, :]
    e = jnp.maximum(e, 0.0)

    # --- last Linear(H, 1) as VPU multiply + lane reduction (f32), then sigmoid ---
    logit = jnp.sum(e * bias_ref[7:8, :], axis=-1, keepdims=True) + bias_ref[8:9, 0:1]
    score = jax.nn.sigmoid(logit)                          # [Gp, 1]

    # Lane-dense store: broadcast the score across 128 lanes (dense vst).
    out_ref[...] = jnp.broadcast_to(score, out_ref.shape)


# ----------------------------- wrapper ---------------------------------------

def predictor_concat_forward(x, a_hat, pool_mat, task, packed_params):
    """Runs the fused Pallas kernel. Returns score with shape [n_graphs] (f32).

    Callers should pass x / a_hat / pool_mat / task already in bf16 (built once
    upstream) so no O(N^2) cast happens per call; jnp.asarray is then a no-op.
    """
    w_in, w_hh, w_cat, bias_pack = packed_params
    n_nodes = x.shape[0]
    n_graphs = pool_mat.shape[0]
    hidden_dim = w_hh.shape[-1]
    bf16 = jnp.bfloat16

    # Pad graph axis to a sublane multiple (>= 8) so the output slab is tile-aligned.
    g_pad = max(8, ((n_graphs + 7) // 8) * 8)
    if g_pad != n_graphs:
        pool_mat = jnp.pad(pool_mat, ((0, g_pad - n_graphs), (0, 0)))
        task = jnp.pad(task, ((0, g_pad - n_graphs), (0, 0)))

    a_hat = jnp.asarray(a_hat, bf16)        # no-op if pre-cast (recommended)
    pool_mat = jnp.asarray(pool_mat, bf16)  # no-op if pre-cast
    # Row-stack node features and (padded) task embeddings so the two K=input_dim
    # entry matmuls become a single MXU pass inside the kernel.
    xt = jnp.concatenate([jnp.asarray(x, bf16), jnp.asarray(task, bf16)], axis=0)

    args = (xt, a_hat, pool_mat, w_in, w_hh, w_cat, bias_pack)
    out_bytes = g_pad * OUT_LANES * 4
    arg_bytes = sum(int(a.size) * a.dtype.itemsize for a in args)

    # Size the scoped-VMEM budget from the chip's real capacity, leaving ~15%
    # headroom for Mosaic internal scratch (v5e/v6e: 128 MiB, v7x: 64 MiB per TC).
    try:
        vmem_cap = int(pltpu.get_tpu_info().vmem_capacity_bytes)
    except Exception:
        vmem_cap = 64 * 2 ** 20            # conservative fallback (v7x per-TC)
    ceiling = int(vmem_cap * 0.85)
    vmem_limit = min(max(8 * 2 ** 20, 4 * (arg_bytes + out_bytes)), ceiling)

    kernel = functools.partial(_predictor_concat_kernel, n_nodes, hidden_dim)

    # TODO(synk): for large N (dense bf16 A_hat ~ 2*N^2 B stops fitting VMEM at N~4-5K
    # on v7x / ~8K on v5e,v6e) switch the two A@H products to a node-tile grid: keep H
    # and the weight slabs resident (constant index_map), stream A_hat in (tm, tk)
    # tiles, contraction axis last and "arbitrary", row axis "parallel" (dual-TC on
    # v7x); tk>=256 on v6e/v7x, >=128 on v5e, tm>=512.  For truly sparse graphs use an
    # SpMM formulation with PrefetchScalarGridSpec-driven row gathers instead.
    # TODO(synk): for a serving loop with fixed weights, keep w_in/w_hh/w_cat/bias_pack
    # resident across calls (cross-call VMEM futures / input_output_aliases) instead of
    # re-DMAing ~200 KiB of weights every invocation.
    vmem_spec = pl.BlockSpec(memory_space=pltpu.MemorySpace.VMEM)
    out = pl.pallas_call(
        kernel,
        out_shape=jax.ShapeDtypeStruct((g_pad, OUT_LANES), jnp.float32),
        in_specs=[vmem_spec] * len(args),
        out_specs=vmem_spec,
        compiler_params=pltpu.CompilerParams(vmem_limit_bytes=vmem_limit),
    )(*args)
    return out[:n_graphs, 0]


# ----------------------------- glue / setup ----------------------------------

def make_params(key, input_dim, hidden_dim):
    """Synthetic parameters matching Predictor_concat.__init__ (n_layers=2,
    n_mlplayers=2, base_conv=GCNConv). Returns (raw f32 params, packed kernel params)."""
    def lin(k, fan_in, fan_out):
        kw, kb = jax.random.split(k)
        lim = 1.0 / jnp.sqrt(jnp.float32(fan_in))
        w = jax.random.uniform(kw, (fan_in, fan_out), jnp.float32, -lim, lim)
        b = jax.random.uniform(kb, (fan_out,), jnp.float32, -lim, lim)
        return w, b

    ks = jax.random.split(key, 8)
    g_w1, g_b1 = lin(ks[0], input_dim, hidden_dim)         # GCNConv(input_dim, H)
    g_w2, g_b2 = lin(ks[1], hidden_dim, hidden_dim)        # GCNConv(H, H)
    pj_w0, pj_b0 = lin(ks[2], input_dim, hidden_dim)       # projector Linear(input_dim, H)
    pj_w1, pj_b1 = lin(ks[3], hidden_dim, hidden_dim)      # projector Linear(H, H)
    pj_w2, pj_b2 = lin(ks[4], hidden_dim, hidden_dim)      # projector Linear(H, H)
    f_w0, f_b0 = lin(ks[5], 2 * hidden_dim, hidden_dim)    # final Linear(2H, H)
    f_w1, f_b1 = lin(ks[6], hidden_dim, hidden_dim)        # final Linear(H, H)
    f_w2, f_b2 = lin(ks[7], hidden_dim, 1)                 # final Linear(H, 1)

    raw = (g_w1, g_b1, g_w2, g_b2,
           pj_w0, pj_b0, pj_w1, pj_b1, pj_w2, pj_b2,
           f_w0, f_b0, f_w1, f_b1, f_w2, f_b2)

    # Packed kernel parameters: 4 slabs (cast to bf16/f32 ONCE here, not per call).
    bf16 = jnp.bfloat16
    w_in = jnp.concatenate([g_w1, pj_w0], axis=1).astype(bf16)          # [in, 2H]
    w_hh = jnp.stack([g_w2, pj_w1, pj_w2, f_w1]).astype(bf16)           # [4, H, H]
    w_cat = f_w0.astype(bf16)                                           # [2H, H]
    bias_pack = jnp.stack([g_b1, g_b2, pj_b0, pj_b1, pj_b2, f_b0, f_b1,
                           f_w2[:, 0],
                           jnp.full((hidden_dim,), f_b2[0], jnp.float32)]
                          ).astype(jnp.float32)                         # [9, H]
    packed = (w_in, w_hh, w_cat, bias_pack)
    return raw, packed


def build_gcn_adjacency(edge_index, num_nodes):
    """Dense symmetric-normalized adjacency with self loops: D^-1/2 (A+I) D^-1/2 (f32)."""
    src, dst = edge_index[0], edge_index[1]
    adj = jnp.zeros((num_nodes, num_nodes), jnp.float32)
    adj = adj.at[dst, src].set(1.0)
    adj = adj + jnp.eye(num_nodes, dtype=jnp.float32)
    deg = jnp.sum(adj, axis=1)
    dinv = jnp.where(deg > 0, 1.0 / jnp.sqrt(deg), 0.0)
    return dinv[:, None] * adj * dinv[None, :]


def build_mean_pool(batch, num_graphs):
    """[n_graphs, N] matrix so that P @ X == global_mean_pool(X, batch) (f32)."""
    onehot = (batch[None, :] == jnp.arange(num_graphs)[:, None]).astype(jnp.float32)
    counts = jnp.maximum(jnp.sum(onehot, axis=1, keepdims=True), 1.0)
    return onehot / counts


def reference_forward(x, a_hat, pool_mat, task, raw, matmul_dtype=jnp.float32):
    """Plain-JAX reference. matmul_dtype=bfloat16 mirrors the kernel's MXU casts."""
    (g_w1, g_b1, g_w2, g_b2,
     pj_w0, pj_b0, pj_w1, pj_b1, pj_w2, pj_b2,
     f_w0, f_b0, f_w1, f_b1, f_w2, f_b2) = raw

    def dot(u, v):
        return jnp.dot(u.astype(matmul_dtype), v.astype(matmul_dtype),
                       preferred_element_type=jnp.float32)

    def l2norm(v):
        sq = jnp.sum(v * v, axis=1, keepdims=True)
        return v * jax.lax.rsqrt(jnp.maximum(sq, 1e-24))

    h = jax.nn.relu(dot(a_hat, dot(x, g_w1)) + g_b1)
    h = dot(a_hat, dot(h, g_w2)) + g_b2
    pooled = l2norm(dot(pool_mat, h))
    t = jax.nn.relu(dot(task, pj_w0) + pj_b0)
    t = jax.nn.relu(dot(t, pj_w1) + pj_b1)
    t = l2norm(dot(t, pj_w2) + pj_b2)
    emb = jnp.concatenate([pooled, t], axis=1)
    e = jax.nn.relu(dot(emb, f_w0) + f_b0)
    e = jax.nn.relu(dot(e, f_w1) + f_b1)
    logit = e @ f_w2 + f_b2            # last layer stays f32 (matches kernel's VPU reduce)
    return jax.nn.sigmoid(logit).reshape(-1)


if __name__ == "__main__":
    INPUT_DIM = 16
    HIDDEN_DIM = 128           # lane-dense hidden width (multiple of 128)
    NODES_PER_GRAPH = 8
    N_GRAPHS = 8
    N_NODES = N_GRAPHS * NODES_PER_GRAPH

    key = jax.random.PRNGKey(0)
    k_x, k_t, k_p = jax.random.split(key, 3)

    node_embedding = jax.random.normal(k_x, (N_NODES, INPUT_DIM), jnp.float32)
    task_embedding = jax.random.normal(k_t, (N_GRAPHS, INPUT_DIM), jnp.float32)

    # N_GRAPHS undirected ring graphs of NODES_PER_GRAPH nodes each.
    batch = jnp.repeat(jnp.arange(N_GRAPHS, dtype=jnp.int32), NODES_PER_GRAPH)
    edges = []
    for g in range(N_GRAPHS):
        base = g * NODES_PER_GRAPH
        for i in range(NODES_PER_GRAPH):
            u, v = base + i, base + (i + 1) % NODES_PER_GRAPH
            edges.append((u, v))
            edges.append((v, u))
    edge_index = jnp.array(edges, jnp.int32).T  # [2, E]

    a_hat_f32 = build_gcn_adjacency(edge_index, N_NODES)
    pool_f32 = build_mean_pool(batch, N_GRAPHS)
    raw_params, packed_params = make_params(k_p, INPUT_DIM, HIDDEN_DIM)

    # Hoisted one-time bf16 casts (the O(N^2) adjacency is NOT re-cast per call).
    bf16 = jnp.bfloat16
    x_bf16 = jax.block_until_ready(node_embedding.astype(bf16))
    task_bf16 = jax.block_until_ready(task_embedding.astype(bf16))
    a_hat_bf16 = jax.block_until_ready(a_hat_f32.astype(bf16))
    pool_bf16 = jax.block_until_ready(pool_f32.astype(bf16))

    forward = jax.jit(predictor_concat_forward)
    score = forward(x_bf16, a_hat_bf16, pool_bf16, task_bf16, packed_params)
    score = jax.block_until_ready(score)
    assert score.shape == (N_GRAPHS,)
    assert bool(jnp.all(jnp.isfinite(score)))

    # Tight check vs. a reference that mirrors the kernel's bf16 matmul casts.
    ref_bf16 = reference_forward(node_embedding, a_hat_f32, pool_f32, task_embedding,
                                 raw_params, jnp.bfloat16)
    assert jnp.allclose(score, ref_bf16, atol=2e-3, rtol=2e-3), (score, ref_bf16)

    # Looser check vs. full-f32 module semantics (error budget = bf16 matmuls).
    ref_f32 = reference_forward(node_embedding, a_hat_f32, pool_f32, task_embedding,
                                raw_params, jnp.float32)
    assert jnp.allclose(score, ref_f32, atol=3e-2, rtol=3e-2), (score, ref_f32)

    # TODO(synk): F.dropout (p=0.5) is treated as identity (eval mode); stochastic
    # training-mode dropout is intentionally not reproduced.
    print("KERNEL_OK")
</pallas_src>

<mosaic_0001>
module attributes {stable_mosaic.version = 11 : i64} {
  func.func @_predictor_concat_kernel(%arg0: memref<72x16xbf16, #tpu.memory_space<vmem>>, %arg1: memref<64x64xbf16, #tpu.memory_space<vmem>>, %arg2: memref<8x64xbf16, #tpu.memory_space<vmem>>, %arg3: memref<16x256xbf16, #tpu.memory_space<vmem>>, %arg4: memref<4x128x128xbf16, #tpu.memory_space<vmem>>, %arg5: memref<256x128xbf16, #tpu.memory_space<vmem>>, %arg6: memref<9x128xf32, #tpu.memory_space<vmem>>, %arg7: memref<8x128xf32, #tpu.memory_space<vmem>>) attributes {dimension_semantics = [], scalar_prefetch = 0 : i64, scratch_operands = 0 : i64, tpu.core_type = #tpu.core_type<tc>} {
    %c0 = arith.constant 0 : index
    %c0_0 = arith.constant 0 : index
    %0 = vector.load %arg1[%c0, %c0_0] : memref<64x64xbf16, #tpu.memory_space<vmem>>, vector<64x64xbf16>
    %c0_1 = arith.constant 0 : index
    %c0_2 = arith.constant 0 : index
    %1 = vector.load %arg0[%c0_1, %c0_2] : memref<72x16xbf16, #tpu.memory_space<vmem>>, vector<72x16xbf16>
    %c0_3 = arith.constant 0 : index
    %c0_4 = arith.constant 0 : index
    %2 = vector.load %arg3[%c0_3, %c0_4] : memref<16x256xbf16, #tpu.memory_space<vmem>>, vector<16x256xbf16>
    %cst = arith.constant dense<0.000000e+00> : vector<72x256xf32>
    %3 = tpu.matmul %1, %2, %cst {dimension_numbers = #tpu.dot_dimension_numbers<[1], [0], [0], [1], [0, 0, 1, 1], [], []>} : vector<72x16xbf16>, vector<16x256xbf16>, vector<72x256xf32> -> vector<72x256xf32>
    %4 = vector.extract_strided_slice %3 {offsets = [0, 0], sizes = [64, 128], strides = [1, 1]} : vector<72x256xf32> to vector<64x128xf32>
    %5 = vector.extract_strided_slice %3 {offsets = [64, 128], sizes = [8, 128], strides = [1, 1]} : vector<72x256xf32> to vector<8x128xf32>
    %6 = arith.truncf %4 : vector<64x128xf32> to vector<64x128xbf16>
    %cst_5 = arith.constant dense<0.000000e+00> : vector<64x128xf32>
    %7 = tpu.matmul %0, %6, %cst_5 {dimension_numbers = #tpu.dot_dimension_numbers<[1], [0], [0], [1], [0, 0, 1, 1], [], []>} : vector<64x64xbf16>, vector<64x128xbf16>, vector<64x128xf32> -> vector<64x128xf32>
    %c0_6 = arith.constant 0 : index
    %c0_7 = arith.constant 0 : index
    %8 = vector.load %arg6[%c0_6, %c0_7] : memref<9x128xf32, #tpu.memory_space<vmem>>, vector<1x128xf32>
    %9 = vector.broadcast %8 : vector<1x128xf32> to vector<64x128xf32>
    %10 = arith.addf %7, %9 : vector<64x128xf32>
    %cst_8 = arith.constant 0.000000e+00 : f32
    %11 = vector.broadcast %cst_8 : f32 to vector<64x128xf32>
    %12 = arith.maximumf %10, %11 : vector<64x128xf32>
    %13 = arith.truncf %12 : vector<64x128xf32> to vector<64x128xbf16>
    %c0_9 = arith.constant 0 : index
    %c0_10 = arith.constant 0 : index
    %c0_11 = arith.constant 0 : index
    %14 = vector.load %arg4[%c0_9, %c0_10, %c0_11] : memref<4x128x128xbf16, #tpu.memory_space<vmem>>, vector<1x128x128xbf16>
    %15 = vector.shape_cast %14 : vector<1x128x128xbf16> to vector<128x128xbf16>
    %cst_12 = arith.constant dense<0.000000e+00> : vector<64x128xf32>
    %16 = tpu.matmul %13, %15, %cst_12 {dimension_numbers = #tpu.dot_dimension_numbers<[1], [0], [0], [1], [0, 0, 1, 1], [], []>} : vector<64x128xbf16>, vector<128x128xbf16>, vector<64x128xf32> -> vector<64x128xf32>
    %17 = arith.truncf %16 : vector<64x128xf32> to vector<64x128xbf16>
    %cst_13 = arith.constant dense<0.000000e+00> : vector<64x128xf32>
    %18 = tpu.matmul %0, %17, %cst_13 {dimension_numbers = #tpu.dot_dimension_numbers<[1], [0], [0], [1], [0, 0, 1, 1], [], []>} : vector<64x64xbf16>, vector<64x128xbf16>, vector<64x128xf32> -> vector<64x128xf32>
    %c1 = arith.constant 1 : index
    %c0_14 = arith.constant 0 : index
    %19 = vector.load %arg6[%c1, %c0_14] : memref<9x128xf32, #tpu.memory_space<vmem>>, vector<1x128xf32>
    %20 = vector.broadcast %19 : vector<1x128xf32> to vector<64x128xf32>
    %21 = arith.addf %18, %20 : vector<64x128xf32>
    %c0_15 = arith.constant 0 : index
    %c0_16 = arith.constant 0 : index
    %22 = vector.load %arg2[%c0_15, %c0_16] : memref<8x64xbf16, #tpu.memory_space<vmem>>, vector<8x64xbf16>
    %23 = arith.truncf %21 : vector<64x128xf32> to vector<64x128xbf16>
    %cst_17 = arith.constant dense<0.000000e+00> : vector<8x128xf32>
    %24 = tpu.matmul %22, %23, %cst_17 {dimension_numbers = #tpu.dot_dimension_numbers<[1], [0], [0], [1], [0, 0, 1, 1], [], []>} : vector<8x64xbf16>, vector<64x128xbf16>, vector<8x128xf32> -> vector<8x128xf32>
    %25 = arith.mulf %24, %24 : vector<8x128xf32>
    %cst_18 = arith.constant dense<0.000000e+00> : vector<8xf32>
    %26 = vector.multi_reduction <add>, %25, %cst_18 [1] : vector<8x128xf32> to vector<8xf32>
    %27 = vector.shape_cast %26 : vector<8xf32> to vector<8x1xf32>
    %cst_19 = arith.constant 1.000000e-24 : f32
    %28 = vector.broadcast %cst_19 : f32 to vector<8x1xf32>
    %29 = arith.maximumf %27, %28 : vector<8x1xf32>
    %30 = math.rsqrt %29 : vector<8x1xf32>
    %31 = vector.broadcast %30 : vector<8x1xf32> to vector<8x128xf32>
    %32 = arith.mulf %24, %31 : vector<8x128xf32>
    %c2 = arith.constant 2 : index
    %c0_20 = arith.constant 0 : index
    %33 = vector.load %arg6[%c2, %c0_20] : memref<9x128xf32, #tpu.memory_space<vmem>>, vector<1x128xf32>
    %34 = vector.broadcast %33 : vector<1x128xf32> to vector<8x128xf32>
    %35 = arith.addf %5, %34 : vector<8x128xf32>
    %cst_21 = arith.constant 0.000000e+00 : f32
    %36 = vector.broadcast %cst_21 : f32 to vector<8x128xf32>
    %37 = arith.maximumf %35, %36 : vector<8x128xf32>
    %38 = arith.truncf %37 : vector<8x128xf32> to vector<8x128xbf16>
    %c1_22 = arith.constant 1 : index
    %c0_23 = arith.constant 0 : index
    %c0_24 = arith.constant 0 : index
    %39 = vector.load %arg4[%c1_22, %c0_23, %c0_24] : memref<4x128x128xbf16, #tpu.memory_space<vmem>>, vector<1x128x128xbf16>
    %40 = vector.shape_cast %39 : vector<1x128x128xbf16> to vector<128x128xbf16>
    %cst_25 = arith.constant dense<0.000000e+00> : vector<8x128xf32>
    %41 = tpu.matmul %38, %40, %cst_25 {dimension_numbers = #tpu.dot_dimension_numbers<[1], [0], [0], [1], [0, 0, 1, 1], [], []>} : vector<8x128xbf16>, vector<128x128xbf16>, vector<8x128xf32> -> vector<8x128xf32>
    %c3 = arith.constant 3 : index
    %c0_26 = arith.constant 0 : index
    %42 = vector.load %arg6[%c3, %c0_26] : memref<9x128xf32, #tpu.memory_space<vmem>>, vector<1x128xf32>
    %43 = vector.broadcast %42 : vector<1x128xf32> to vector<8x128xf32>
    %44 = arith.addf %41, %43 : vector<8x128xf32>
    %cst_27 = arith.constant 0.000000e+00 : f32
    %45 = vector.broadcast %cst_27 : f32 to vector<8x128xf32>
    %46 = arith.maximumf %44, %45 : vector<8x128xf32>
    %47 = arith.truncf %46 : vector<8x128xf32> to vector<8x128xbf16>
    %c2_28 = arith.constant 2 : index
    %c0_29 = arith.constant 0 : index
    %c0_30 = arith.constant 0 : index
    %48 = vector.load %arg4[%c2_28, %c0_29, %c0_30] : memref<4x128x128xbf16, #tpu.memory_space<vmem>>, vector<1x128x128xbf16>
    %49 = vector.shape_cast %48 : vector<1x128x128xbf16> to vector<128x128xbf16>
    %cst_31 = arith.constant dense<0.000000e+00> : vector<8x128xf32>
    %50 = tpu.matmul %47, %49, %cst_31 {dimension_numbers = #tpu.dot_dimension_numbers<[1], [0], [0], [1], [0, 0, 1, 1], [], []>} : vector<8x128xbf16>, vector<128x128xbf16>, vector<8x128xf32> -> vector<8x128xf32>
    %c4 = arith.constant 4 : index
    %c0_32 = arith.constant 0 : index
    %51 = vector.load %arg6[%c4, %c0_32] : memref<9x128xf32, #tpu.memory_space<vmem>>, vector<1x128xf32>
    %52 = vector.broadcast %51 : vector<1x128xf32> to vector<8x128xf32>
    %53 = arith.addf %50, %52 : vector<8x128xf32>
    %54 = arith.mulf %53, %53 : vector<8x128xf32>
    %cst_33 = arith.constant dense<0.000000e+00> : vector<8xf32>
    %55 = vector.multi_reduction <add>, %54, %cst_33 [1] : vector<8x128xf32> to vector<8xf32>
    %56 = vector.shape_cast %55 : vector<8xf32> to vector<8x1xf32>
    %cst_34 = arith.constant 1.000000e-24 : f32
    %57 = vector.broadcast %cst_34 : f32 to vector<8x1xf32>
    %58 = arith.maximumf %56, %57 : vector<8x1xf32>
    %59 = math.rsqrt %58 : vector<8x1xf32>
    %60 = vector.broadcast %59 : vector<8x1xf32> to vector<8x128xf32>
    %61 = arith.mulf %53, %60 : vector<8x128xf32>
    %62 = arith.truncf %32 : vector<8x128xf32> to vector<8x128xbf16>
    %63 = arith.truncf %61 : vector<8x128xf32> to vector<8x128xbf16>
    %64 = tpu.concatenate %62, %63 in 1 : vector<8x128xbf16>, vector<8x128xbf16> -> vector<8x256xbf16>
    %c0_35 = arith.constant 0 : index
    %c0_36 = arith.constant 0 : index
    %65 = vector.load %arg5[%c0_35, %c0_36] : memref<256x128xbf16, #tpu.memory_space<vmem>>, vector<256x128xbf16>
    %cst_37 = arith.constant dense<0.000000e+00> : vector<8x128xf32>
    %66 = tpu.matmul %64, %65, %cst_37 {dimension_numbers = #tpu.dot_dimension_numbers<[1], [0], [0], [1], [0, 0, 1, 1], [], []>} : vector<8x256xbf16>, vector<256x128xbf16>, vector<8x128xf32> -> vector<8x128xf32>
    %c5 = arith.constant 5 : index
    %c0_38 = arith.constant 0 : index
    %67 = vector.load %arg6[%c5, %c0_38] : memref<9x128xf32, #tpu.memory_space<vmem>>, vector<1x128xf32>
    %68 = vector.broadcast %67 : vector<1x128xf32> to vector<8x128xf32>
    %69 = arith.addf %66, %68 : vector<8x128xf32>
    %cst_39 = arith.constant 0.000000e+00 : f32
    %70 = vector.broadcast %cst_39 : f32 to vector<8x128xf32>
    %71 = arith.maximumf %69, %70 : vector<8x128xf32>
    %72 = arith.truncf %71 : vector<8x128xf32> to vector<8x128xbf16>
    %c3_40 = arith.constant 3 : index
    %c0_41 = arith.constant 0 : index
    %c0_42 = arith.constant 0 : index
    %73 = vector.load %arg4[%c3_40, %c0_41, %c0_42] : memref<4x128x128xbf16, #tpu.memory_space<vmem>>, vector<1x128x128xbf16>
    %74 = vector.shape_cast %73 : vector<1x128x128xbf16> to vector<128x128xbf16>
    %cst_43 = arith.constant dense<0.000000e+00> : vector<8x128xf32>
    %75 = tpu.matmul %72, %74, %cst_43 {dimension_numbers = #tpu.dot_dimension_numbers<[1], [0], [0], [1], [0, 0, 1, 1], [], []>} : vector<8x128xbf16>, vector<128x128xbf16>, vector<8x128xf32> -> vector<8x128xf32>
    %c6 = arith.constant 6 : index
    %c0_44 = arith.constant 0 : index
    %76 = vector.load %arg6[%c6, %c0_44] : memref<9x128xf32, #tpu.memory_space<vmem>>, vector<1x128xf32>
    %77 = vector.broadcast %76 : vector<1x128xf32> to vector<8x128xf32>
    %78 = arith.addf %75, %77 : vector<8x128xf32>
    %cst_45 = arith.constant 0.000000e+00 : f32
    %79 = vector.broadcast %cst_45 : f32 to vector<8x128xf32>
    %80 = arith.maximumf %78, %79 : vector<8x128xf32>
    %c7 = arith.constant 7 : index
    %c0_46 = arith.constant 0 : index
    %81 = vector.load %arg6[%c7, %c0_46] : memref<9x128xf32, #tpu.memory_space<vmem>>, vector<1x128xf32>
    %82 = vector.broadcast %81 : vector<1x128xf32> to vector<8x128xf32>
    %83 = arith.mulf %80, %82 : vector<8x128xf32>
    %cst_47 = arith.constant dense<0.000000e+00> : vector<8xf32>
    %84 = vector.multi_reduction <add>, %83, %cst_47 [1] : vector<8x128xf32> to vector<8xf32>
    %85 = vector.shape_cast %84 : vector<8xf32> to vector<8x1xf32>
    %c8 = arith.constant 8 : index
    %c0_48 = arith.constant 0 : index
    %86 = vector.load %arg6[%c8, %c0_48] : memref<9x128xf32, #tpu.memory_space<vmem>>, vector<1x1xf32>
    %87 = vector.broadcast %86 : vector<1x1xf32> to vector<8x1xf32>
    %88 = arith.addf %85, %87 : vector<8x1xf32>
    %89 = arith.negf %88 : vector<8x1xf32>
    %90 = math.exp %89 : vector<8x1xf32>
    %cst_49 = arith.constant 1.000000e+00 : f32
    %91 = vector.broadcast %cst_49 : f32 to vector<8x1xf32>
    %92 = arith.addf %91, %90 : vector<8x1xf32>
    %93 = arith.divf %91, %92 : vector<8x1xf32>
    %94 = vector.shape_cast %93 : vector<8x1xf32> to vector<8x1xf32>
    %95 = vector.broadcast %94 : vector<8x1xf32> to vector<8x128xf32>
    %c0_50 = arith.constant 0 : index
    %c0_51 = arith.constant 0 : index
    %96 = vector.load %arg7[%c0_50, %c0_51] : memref<8x128xf32, #tpu.memory_space<vmem>>, vector<8x128xf32>
    tpu.vector_store %arg7[%c0_50, %c0_51], %95 {strides = array<i32>} : memref<8x128xf32, #tpu.memory_space<vmem>>, vector<8x128xf32>,
    return
  }
}

</mosaic_0001>

<bundles_post_ra>
// kernel: predictor_concat_forward.1
= control target key start
LH: loop header
LB: loop body
LE: loop exit
PB: predicated region body
PF: predicated region fallthrough
CT: control target
= control target key end

     0   :  { %12 = vsyncpa [#allocation3], 0  ;;  %s1871_s0 = inlined_call_operand.vmem [shape: bf16[72,16], index: 0, kind: input, shape index: {}]   ;;  %s1872_s1 = inlined_call_operand.hbm [shape: bf16[64,64], index: 1, kind: input, shape index: {}]   ;;  %s1873_s2 = inlined_call_operand.vmem [shape: bf16[8,64], index: 2, kind: input, shape index: {}]   ;;  %s1874_s3 = inlined_call_operand.hbm [shape: bf16[16,256], index: 3, kind: input, shape index: {}]   ;;  %s1875_s4 = inlined_call_operand.hbm [shape: bf16[4,128,128], index: 4, kind: input, shape index: {}]   ;;  %s1876_s5 = inlined_call_operand.vmem [shape: bf16[256,128], index: 5, kind: input, shape index: {}]   ;;  %s1877_s6 = inlined_call_operand.hbm [shape: f32[9,128], index: 6, kind: input, shape index: {}]   ;;  %s1878_s7 = inlined_call_operand.vmem [shape: f32[8,128], index: 7, kind: output, shape index: {}]  }
   0x1   :  { %13 = vsyncpa [#allocation5], 0 }
   0x2   :  { %14 = vsyncpa [#allocation8], 0  ;;  %s1623_s24 = smov [#allocation4]   ;;  %s1529_s28 = scalar_lea.hbm %s1874_s3, 256 }
   0x3   :  { %s36_s25 = sshll.u32 %s1623_s24, 4  ;;  %p1530_p0 = scmp.ne.s32.totalorder %s1874_s3, %s1529_s28  ;;  %s37_s25 = int_to_ptr.vmem [resolvable:$true] %s36_s25 }
   0x4   :  { %p1533_p1 = scmp.lt.u32.totalorder %s1529_s28, %s1874_s3 }
   0x6   :  { %p1535_p2 = pnand %p1533_p1, %p1530_p0 }
   0x8   :  { %1538 = shalt.err (!%p1535_p2)
}
   0x9   :  { %s1539_s10 = scalar_lea.vmem %s37_s25, 256  ;;  %p1544_p4 = scmp.lt.s32.totalorder %s37_s25, %s37_s25 }
   0xa   :  { %p1540_p3 = scmp.ne.s32.totalorder %s37_s25, %s1539_s10  ;;  %p1545_p5 = scmp.lt.s32.totalorder %s1539_s10, %s1539_s10 }
   0xc   :  { %p1546_p6 = por %p1545_p5, %p1544_p4 }
   0xe   :  { %p1547_p7 = pnand %p1546_p6, %p1540_p3 }
  0x10   :  { %1550 = shalt.err (!%p1547_p7)
}
  0x11   :  { %s1624_s11 = smov 128   ;;  %s1625_s12 = smov 8  }
  0x12   :  { %42 = dma.hbm_to_vmem [thread:$0]  %s1874_s3, 256, %s37_s25, [#allocation5], %s1624_s11, %s1624_s11, %s1625_s12  }
  0x13   :  { %s1626_s15 = smov [#allocation2]   ;;  %s1551_s19 = scalar_lea.hbm %s1872_s1, 512 }
  0x14   :  { %s22_s16 = sshll.u32 %s1626_s15, 4  ;;  %p1552_p8 = scmp.ne.s32.totalorder %s1872_s1, %s1551_s19  ;;  %s23_s16 = int_to_ptr.vmem [resolvable:$true] %s22_s16 }
  0x15   :  { %p1555_p9 = scmp.lt.u32.totalorder %s1551_s19, %s1872_s1 }
  0x17   :  { %p1557_p10 = pnand %p1555_p9, %p1552_p8 }
  0x19   :  { %1560 = shalt.err (!%p1557_p10)
}
  0x1a   :  { %s1561_s24 = scalar_lea.vmem %s23_s16, 512  ;;  %p1566_p12 = scmp.lt.s32.totalorder %s23_s16, %s23_s16 }
  0x1b   :  { %p1562_p11 = scmp.ne.s32.totalorder %s23_s16, %s1561_s24  ;;  %p1567_p13 = scmp.lt.s32.totalorder %s1561_s24, %s1561_s24 }
  0x1d   :  { %p1568_p0 = por %p1567_p13, %p1566_p12 }
  0x1f   :  { %p1569_p1 = pnand %p1568_p0, %p1562_p11 }
  0x21   :  { %1572 = shalt.err (!%p1569_p1)
}
  0x22   :  { %s1627_s3 = smov 64   ;;  %s1628_s25 = smov 4  }
  0x23   :  { %28 = dma.hbm_to_vmem [thread:$0]  %s1872_s1, 512, %s23_s16, [#allocation3], %s1627_s3, %s1627_s3, %s1628_s25  }
  0x24   :  { %s1629_s28 = smov [#allocation6]   ;;  %s1630_s30 = smov [#allocation7]  }
  0x25   :  { %s48_s29 = sshll.u32 %s1629_s28, 4  ;;  %s62_s8 = sshll.u32 %s1630_s30, 4  ;;  %s49_s29 = int_to_ptr.vmem [resolvable:$true] %s48_s29  ;;  %s1701_s8 = int_to_ptr.vmem [resolvable:$true] %s62_s8 }
  0x26   :  { %s1573_s13 = scalar_lea.hbm %s1875_s4, 4096 }
  0x27   :  { %p1574_p2 = scmp.ne.s32.totalorder %s1875_s4, %s1573_s13  ;;  %p1577_p3 = scmp.lt.u32.totalorder %s1573_s13, %s1875_s4 }
  0x29   :  { %p1579_p4 = pnand %p1577_p3, %p1574_p2 }
  0x2b   :  { %1582 = shalt.err (!%p1579_p4)
}
  0x2c   :  { %s1583_s1 = scalar_lea.vmem %s49_s29, 4096  ;;  %p1588_p6 = scmp.lt.s32.totalorder %s49_s29, %s49_s29 }
  0x2d   :  { %p1584_p5 = scmp.ne.s32.totalorder %s49_s29, %s1583_s1  ;;  %p1589_p7 = scmp.lt.s32.totalorder %s1583_s1, %s1583_s1 }
  0x2f   :  { %p1590_p8 = por %p1589_p7, %p1588_p6 }
  0x31   :  { %p1591_p9 = pnand %p1590_p8, %p1584_p5 }
  0x33   :  { %1594 = shalt.err (!%p1591_p9)
}
  0x34   :  { %54 = dma.hbm_to_vmem [thread:$0]  %s1875_s4, 4096, %s49_s29, [#allocation5], %s1627_s3, %s1627_s3, %s1628_s25  }
  0x35   :  { %s1595_s22 = scalar_lea.hbm %s1877_s6, 256 }
  0x36   :  { %p1596_p10 = scmp.ne.s32.totalorder %s1877_s6, %s1595_s22  ;;  %p1599_p11 = scmp.lt.u32.totalorder %s1595_s22, %s1877_s6 }
  0x38   :  { %p1601_p12 = pnand %p1599_p11, %p1596_p10 }
  0x3a   :  { %1604 = shalt.err (!%p1601_p12)
}
  0x3b   :  { %s1605_s28 = scalar_lea.vmem %s1701_s8, 256  ;;  %p1610_p0 = scmp.lt.s32.totalorder %s1701_s8, %s1701_s8 }
  0x3c   :  { %p1606_p13 = scmp.ne.s32.totalorder %s1701_s8, %s1605_s28  ;;  %p1611_p1 = scmp.lt.s32.totalorder %s1605_s28, %s1605_s28 }
  0x3e   :  { %p1612_p2 = por %p1611_p1, %p1610_p0 }
  0x40   :  { %p1613_p3 = pnand %p1612_p2, %p1606_p13 }
  0x42   :  { %1616 = shalt.err (!%p1613_p3)
}
  0x43   :  { %68 = dma.hbm_to_vmem [thread:$0]  %s1877_s6, 256, %s1701_s8, [#allocation8], %s1624_s11, %s1624_s11, %s1625_s12  }
  0x44   :  { %1617 = dma.done.wait [#allocation3], 512  }
  0x45   :  { %1618 = vsyncadd [#allocation3], 4294966784 }
  0x46   :  { %1619 = dma.done.wait [#allocation5], 4352  }
  0x47   :  { %1620 = vsyncadd [#allocation5], 4294962944 }
  0x48   :  { %1621 = dma.done.wait [#allocation8], 256  }
  0x49   :  { %1622 = vsyncadd [#allocation8], 4294967040  ;;  %v1631_v0 = vmov 0   ;;  %v1461_v1 = vld [vmem:[#allocation4 + $0x4] ss:$8 sps:$4 sm:$0xff]   ;;  %vm134_vm0 = vcmask 130048  }
  0x4a   :  { %182 = vmatprep.mubr.bf16.mxu0 %v1631_v0  ;;  %1459 = vset.pattern.permute.xlu1 %v1631_v0  ;;  %v1463_v2 = vld [vmem:[#allocation4] ss:$8 sps:$4 sm:$0xff]   ;;  %v1466_v5 = vld [vmem:[%s1871_s0 + $0x10] sm:$0xff]   ;;  %v1467_v6 = vld [vmem:[%s1871_s0 + $0x18] sm:$0xff]   ;;  %vm251_vm1 = vcmask 523264   ;;  %v1632_v41 = vmov 0.0  }
  0x4b   :  { %1460 = vset.pattern.permute.xlu0 %v1631_v0  ;;  %150 = vmatprep.subr.bf16.mxu0 %v1461_v1  ;;  %v1464_v3 = vld [vmem:[%s1871_s0] sm:$0xff]   ;;  %v1465_v4 = vld [vmem:[%s1871_s0 + $0x8] sm:$0xff]   ;;  %v1472_v8 = vld [vmem:[#allocation6] sm:$0xff]   ;;  %vm1633_vm2 = vmmov 0  }
  0x4c   :  { %151 = vmatpush1.bf16.msra.mxu0 %v1463_v2  ;;  %v1468_v7 = vld [vmem:[#allocation2] sm:$0xff]   ;;  %v1473_v9 = vld [vmem:[#allocation6 + $0x8] sm:$0xff]   ;;  %v1475_v12 = vld [vmem:[#allocation6 + $0x18] sm:$0xff]  }
  0x4d   :  { %1328 = vmatprep.mubr.msk.bf16.mxu1 %vm251_vm1, %v1468_v7  ;;  %1336 = vmatprep.subr.bf16.mxu0 %v1472_v8  ;;  %v1478_v10 = vld [vmem:[%s1871_s0 + $0x20] ss:$0 sps:$4 sm:$0xff]   ;;  %v1476_v13 = vld [vmem:[#allocation6 + $0x20] sm:$0xff]   ;;  %v1477_v14 = vld [vmem:[#allocation6 + $0x28] sm:$0xff]  }
  0x4e   :  { %v1474_v11 = vld [vmem:[#allocation6 + $0x10] sm:$0xff]   ;;  %v1756_v35 = vld [vmem:[#allocation2 + $0x8] sm:$0xff]   ;;  %v1758_v36 = vld [vmem:[#allocation2 + $0x10] sm:$0xff]  }
  0x4f   :  { %1162 = vmatmul.mubr.msk.bf16.vlgmr.msra.gmra.mrb[0].mxu0 %vm134_vm0, %v1464_v3  ;;  %v1764_v37 = vld [vmem:[#allocation2 + $0x18] sm:$0xff]   ;;  %v1479_v38 = vld [vmem:[#allocation6 + $0x30] sm:$0xff]   ;;  %v1480_v39 = vld [vmem:[#allocation6 + $0x38] sm:$0xff]  }
  0x50   :  { %190 = vmatprep.mubr.bf16.mxu0 %v1631_v0  ;;  %1337 = vmatpush3.bf16.msra.mxu0 %v1472_v8  ;;  %v1167_v45 = vld [vmem:[#allocation7] ss:$0 sm:$0xff] }
  0x51   :  { %1338 = vmatprep.subr.bf16.mxu0 %v1473_v9  ;;  %v1481_v61 = vld [vmem:[#allocation6 + $0x40] sm:$0xff]  }
  0x54   :  { %1339 = vmatpush3.bf16.msra.mxu0 %v1473_v9 }
  0x55   :  { %1340 = vmatprep.subr.bf16.mxu0 %v1474_v11 }
  0x57   :  { %1163 = vmatmul.mubr.msk.bf16.gmra.mrb[4].mxu0 %vm134_vm0, %v1465_v4 }
  0x58   :  { %198 = vmatprep.mubr.bf16.mxu0 %v1631_v0  ;;  %1341 = vmatpush3.bf16.msra.mxu0 %v1474_v11 }
  0x59   :  { %1342 = vmatprep.subr.bf16.mxu0 %v1475_v12 }
  0x5c   :  { %1343 = vmatpush3.bf16.msra.mxu0 %v1475_v12  ;;  %v1483_v12 = vld [vmem:[#allocation6 + $0x50] sm:$0xff]  }
  0x5d   :  { %1344 = vmatprep.subr.bf16.mxu0 %v1476_v13 }
  0x5f   :  { %1164 = vmatmul.mubr.msk.bf16.gmra.mrb[8].mxu0 %vm134_vm0, %v1466_v5  ;;  %v1482_v5 = vld [vmem:[#allocation6 + $0x48] sm:$0xff]  }
  0x60   :  { %206 = vmatprep.mubr.bf16.mxu0 %v1631_v0  ;;  %1345 = vmatpush3.bf16.msra.mxu0 %v1476_v13  ;;  %v1484_v13 = vld [vmem:[#allocation6 + $0x58] sm:$0xff]  }
  0x61   :  { %1346 = vmatprep.subr.bf16.mxu0 %v1477_v14 }
  0x64   :  { %1347 = vmatpush3.bf16.msra.mxu0 %v1477_v14  ;;  %v1485_v14 = vld [vmem:[#allocation6 + $0x60] sm:$0xff]  }
  0x65   :  { %1348 = vmatprep.subr.bf16.mxu0 %v1479_v38 }
  0x67   :  { %1165 = vmatmul.mubr.msk.bf16.gmra.mrb[12].mxu0 %vm134_vm0, %v1467_v6 }
  0x68   :  { %214 = vmatprep.mubr.bf16.mxu0 %v1631_v0  ;;  %1349 = vmatpush3.bf16.msra.mxu0 %v1479_v38 }
  0x69   :  { %1350 = vmatprep.subr.bf16.mxu0 %v1480_v39 }
  0x6c   :  { %1351 = vmatpush3.bf16.msra.mxu0 %v1480_v39 }
  0x6d   :  { %1388 = vmatprep.subr.bf16.mxu0 %v1632_v41 }
  0x6f   :  { %1166 = vmatmul.mubr.msk.bf16.gmra.mrb[16].mxu0 %vm134_vm0, %v1478_v10 }
 0x122   :  { %v184_v15 = vpop.f32.mrb[0].mxu0 }
 0x123   :  { %v186_v16 = vpop.f32.mrb[1].mxu0 }
 0x124   :  { %v187_v17 = vpop.f32.mrb[2].mxu0  ;;  %v1190_v16 = vld [vmem:[#allocation7 + $0x2] ss:$0 sm:$0xff] }
 0x125   :  { %v222_v18 = vpack.c.bf16 %v187_v17, %v184_v15  ;;  %v189_v19 = vpop.f32.mrb[3].mxu0  ;;  %v1486_v15 = vld [vmem:[#allocation6 + $0x68] sm:$0xff]  }
 0x127   :  { %1320 = vmatprep.subr.bf16.mxu1 %v222_v18 }
 0x128   :  { %1321 = vmatpush3.bf16.msra.mxu1 %v222_v18  ;;  %v1487_v18 = vld [vmem:[#allocation6 + $0x70] sm:$0xff]  }
 0x12a   :  { %v192_v20 = vpop.f32.mrb[4].mxu0 }
 0x12b   :  { %v194_v21 = vpop.f32.mrb[5].mxu0 }
 0x12c   :  { %v195_v22 = vpop.f32.mrb[6].mxu0 }
 0x12d   :  { %v223_v23 = vpack.c.bf16 %v195_v22, %v192_v20  ;;  %v197_v24 = vpop.f32.mrb[7].mxu0  ;;  %v1488_v20 = vld [vmem:[#allocation6 + $0x78] sm:$0xff]  }
 0x12f   :  { %1322 = vmatprep.subr.bf16.mxu1 %v223_v23 }
 0x130   :  { %1323 = vmatpush3.bf16.msra.mxu1 %v223_v23 }
 0x132   :  { %v200_v25 = vpop.f32.mrb[8].mxu0 }
 0x133   :  { %v202_v26 = vpop.f32.mrb[9].mxu0 }
 0x134   :  { %v203_v27 = vpop.f32.mrb[10].mxu0 }
 0x135   :  { %v224_v28 = vpack.c.bf16 %v203_v27, %v200_v25  ;;  %v205_v29 = vpop.f32.mrb[11].mxu0 }
 0x137   :  { %1324 = vmatprep.subr.bf16.mxu1 %v224_v28 }
 0x138   :  { %1325 = vmatpush3.bf16.msra.mxu1 %v224_v28 }
 0x13a   :  { %v208_v30 = vpop.f32.mrb[12].mxu0 }
 0x13b   :  { %v210_v31 = vpop.f32.mrb[13].mxu0 }
 0x13c   :  { %v211_v32 = vpop.f32.mrb[14].mxu0 }
 0x13d   :  { %v225_v33 = vpack.c.bf16 %v211_v32, %v208_v30  ;;  %v213_v34 = vpop.f32.mrb[15].mxu0 }
 0x13f   :  { %1326 = vmatprep.subr.bf16.mxu1 %v225_v33 }
 0x140   :  { %1327 = vmatpush3.bf16.msra.mxu1 %v225_v33 }
 0x142   :  { %v216_v40 = vpop.f32.mrb[16].mxu0 }
 0x143   :  { %1329 = vmatmul.mubr.msk.bf16.vlgmr.msra.gmra.mrb[0].mxu1 %vm251_vm1, %v1756_v35  ;;  %v217_v42 = vpop.f32.mrb[17].mxu0 }
 0x144   :  { %1332 = vmatprep.mubr.msk.bf16.mxu1 %vm251_vm1, %v1758_v36  ;;  %v219_v43 = vpop.f32.mrb[18].mxu0  ;;  %v603_v17 = vadd.f32 %v1190_v16, %v217_v42 }
 0x145   :  { %v220_v44 = vpop.f32.mrb[19].mxu0  ;;  %v1184_v43 = vld [vmem:[#allocation7 + $0x1] ss:$0 sm:$0xff] }
 0x146   :  { %v604_v19 = vmax.f32 %v603_v17, 0.0 }
 0x148   :  { %v605_v21 = vpack.c.bf16 %v604_v19, %v604_v19  ;;  %v1200_v19 = vld [vmem:[#allocation7 + $0x4] ss:$0 sm:$0xff] }
 0x14b   :  { %1333 = vmatmul.mubr.msk.bf16.gmra.mrb[4].mxu1 %vm251_vm1, %v1764_v37 }
 0x14c   :  { %1368 = vmatprep.mubr.msk.bf16.mxu1 %vm251_vm1, %v1468_v7 }
 0x216   :  { %v1330_v46 = vpop.f32.mrb[0].mxu1 }
 0x217   :  { %v307_v47 = vadd.f32 %v1330_v46, %v1167_v45  ;;  %v298_v48 = vpop.f32.mrb[1].mxu1 }
 0x218   :  { %v299_v49 = vadd.f32 %v1167_v45, %v298_v48  ;;  %v1331_v50 = vpop.f32.mrb[2].mxu1 }
 0x219   :  { %v310_v51 = vadd.f32 %v1331_v50, %v1167_v45  ;;  %v301_v52 = vpop.f32.mrb[3].mxu1  ;;  %v331_v54 = vmax.f32 %v307_v47, 0.0 }
 0x21a   :  { %v302_v53 = vadd.f32 %v1167_v45, %v301_v52  ;;  %v329_v56 = vmax.f32 %v299_v49, 0.0 }
 0x21b   :  { %v332_v55 = vmax.f32 %v310_v51, 0.0 }
 0x21c   :  { %v330_v57 = vmax.f32 %v302_v53, 0.0 }
 0x21d   :  { %v338_v58 = vpack.c.bf16 %v332_v55, %v331_v54 }
 0x21e   :  { %v337_v59 = vpack.c.bf16 %v330_v57, %v329_v56  ;;  %v1334_v60 = vpop.f32.mrb[4].mxu1 }
 0x21f   :  { %v323_v62 = vadd.f32 %v1334_v60, %v1167_v45  ;;  %v314_v63 = vpop.f32.mrb[5].mxu1  ;;  %v544_v60 = vld [vmem:[%s1873_s2] sm:$0xf] }
 0x220   :  { %v315_v0 = vadd.f32 %v1167_v45, %v314_v63  ;;  %v1335_v1 = vpop.f32.mrb[6].mxu1  ;;  %1352 = vmatprep.mubr.bf16.mxu0 %v337_v59  ;;  %v1491_v63 = vld [vmem:[#allocation6 + $0x90] sm:$0xff]  }
 0x221   :  { %v326_v2 = vadd.f32 %v1335_v1, %v1167_v45  ;;  %v317_v3 = vpop.f32.mrb[7].mxu1  ;;  %1353 = vmatmul.mubr.bf16.vlgmr.msra.gmra.mrb[20].mxu0 %v338_v58  ;;  %v335_v6 = vmax.f32 %v323_v62, 0.0  ;;  %v1490_v62 = vld [vmem:[#allocation6 + $0x88] sm:$0xff]   ;;  %v1493_v1 = vld [vmem:[#allocation6 + $0xa0] sm:$0xff]  }
 0x222   :  { %v318_v4 = vadd.f32 %v1167_v45, %v317_v3  ;;  %1389 = vmatpush3.bf16.msra.mxu0 %v1481_v61  ;;  %v333_v8 = vmax.f32 %v315_v0, 0.0  ;;  %v1489_v61 = vld [vmem:[#allocation6 + $0x80] sm:$0xff]   ;;  %v1492_v0 = vld [vmem:[#allocation6 + $0x98] sm:$0xff]  }
 0x223   :  { %v336_v7 = vmax.f32 %v326_v2, 0.0  ;;  %1390 = vmatprep.subr.bf16.mxu0 %v1632_v41  ;;  %v1494_v2 = vld [vmem:[#allocation6 + $0xa8] sm:$0xff]   ;;  %v1191_v3 = vld [vmem:[#allocation7 + $0x3] ss:$0 sm:$0xff] }
 0x224   :  { %v334_v9 = vmax.f32 %v318_v4, 0.0  ;;  %v1495_v4 = vld [vmem:[#allocation6 + $0xb0] sm:$0xff]  }
 0x225   :  { %v340_v10 = vpack.c.bf16 %v336_v7, %v335_v6  ;;  %v1496_v6 = vld [vmem:[#allocation6 + $0xb8] sm:$0xff]  }
 0x226   :  { %v339_v11 = vpack.c.bf16 %v334_v9, %v333_v8  ;;  %1391 = vmatpush3.bf16.msra.mxu0 %v1482_v5  ;;  %v1497_v9 = vld [vmem:[%s1876_s5 + $0x40] sm:$0xff]  }
 0x227   :  { %1392 = vmatprep.subr.bf16.mxu0 %v1632_v41 }
 0x228   :  { %1356 = vmatprep.mubr.bf16.mxu0 %v339_v11  ;;  %v1499_v11 = vld [vmem:[%s1876_s5 + $0x48] sm:$0xff]  }
 0x229   :  { %1357 = vmatmul.mubr.bf16.gmra.mrb[24].mxu0 %v340_v10  ;;  %v1498_v10 = vld [vmem:[%s1876_s5] sm:$0xff]  }
 0x22a   :  { %1393 = vmatpush3.bf16.msra.mxu0 %v1483_v12  ;;  %1404 = vmatprep.mubr.msk.bf16.mxu0 %vm1633_vm2, %v1632_v41  ;;  %v1500_v12 = vld [vmem:[%s1876_s5 + $0x8] sm:$0xff]  }
 0x22b   :  { %1394 = vmatprep.subr.bf16.mxu0 %v1632_v41 }
 0x22e   :  { %1395 = vmatpush3.bf16.msra.mxu0 %v1484_v13  ;;  %v1501_v13 = vld [vmem:[%s1876_s5 + $0x50] sm:$0xff]  }
 0x22f   :  { %1396 = vmatprep.subr.bf16.mxu0 %v1632_v41 }
 0x232   :  { %1397 = vmatpush3.bf16.msra.mxu0 %v1485_v14  ;;  %v1502_v14 = vld [vmem:[%s1876_s5 + $0x10] sm:$0xff]  }
 0x233   :  { %1398 = vmatprep.subr.bf16.mxu0 %v1632_v41 }
 0x236   :  { %1399 = vmatpush3.bf16.msra.mxu0 %v1486_v15 }
 0x237   :  { %1400 = vmatprep.subr.bf16.mxu0 %v1632_v41 }
 0x23a   :  { %1401 = vmatpush3.bf16.msra.mxu0 %v1487_v18 }
 0x23b   :  { %1402 = vmatprep.subr.bf16.mxu0 %v1632_v41 }
 0x23e   :  { %1403 = vmatpush3.bf16.msra.mxu0 %v1488_v20 }
 0x23f   :  { %1289 = vmatprep.subr.bf16.mxu0 %v1497_v9  ;;  %v1236_v9 = vld [vmem:[#allocation7 + $0x8] ss:$0 sm:$0xff] }
 0x241   :  { %1405 = vmatmul.mubr.bf16.vlgmr.msra.gmra.mrb[28].mxu0 %v605_v21 }
 0x242   :  { %1290 = vmatpush3.bf16.msra.mxu0 %v1498_v10 }
 0x243   :  { %1291 = vmatprep.subr.bf16.mxu0 %v1499_v11 }
 0x246   :  { %1292 = vmatpush3.bf16.msra.mxu0 %v1500_v12 }
 0x247   :  { %1293 = vmatprep.subr.bf16.mxu0 %v1501_v13 }
 0x24a   :  { %1294 = vmatpush3.bf16.msra.mxu0 %v1502_v14 }
 0x2f4   :  { %v1354_v22 = vpop.f32.mrb[20].mxu0 }
 0x2f5   :  { %v439_v23 = vpop.f32.mrb[21].mxu0 }
 0x2f6   :  { %v1355_v24 = vpop.f32.mrb[22].mxu0 }
 0x2f7   :  { %v471_v25 = vpack.c.bf16 %v1355_v24, %v1354_v22  ;;  %v442_v26 = vpop.f32.mrb[23].mxu0 }
 0x2f8   :  { %v470_v27 = vpack.c.bf16 %v442_v26, %v439_v23 }
 0x2fa   :  { %1360 = vmatprep.subr.bf16.mxu1 %v470_v27 }
 0x2fb   :  { %1361 = vmatpush3.bf16.msra.mxu1 %v470_v27  ;;  %v1503_v27 = vld [vmem:[%s1876_s5 + $0x58] sm:$0xff]  }
 0x2fc   :  { %v1358_v28 = vpop.f32.mrb[24].mxu0  ;;  %1362 = vmatprep.subr.bf16.mxu1 %v471_v25  ;;  %1295 = vmatprep.subr.bf16.mxu0 %v1503_v27 }
 0x2fd   :  { %v455_v29 = vpop.f32.mrb[25].mxu0 }
 0x2fe   :  { %v1359_v30 = vpop.f32.mrb[26].mxu0 }
 0x2ff   :  { %v473_v31 = vpack.c.bf16 %v1359_v30, %v1358_v28  ;;  %v458_v32 = vpop.f32.mrb[27].mxu0  ;;  %1363 = vmatpush3.bf16.msra.mxu1 %v471_v25  ;;  %v1504_v28 = vld [vmem:[%s1876_s5 + $0x18] sm:$0xff]   ;;  %v1506_v30 = vld [vmem:[%s1876_s5 + $0x20] sm:$0xff]  }
 0x300   :  { %v472_v33 = vpack.c.bf16 %v458_v32, %v455_v29  ;;  %1296 = vmatpush3.bf16.msra.mxu0 %v1504_v28  ;;  %v1505_v29 = vld [vmem:[%s1876_s5 + $0x60] sm:$0xff]   ;;  %v1508_v32 = vld [vmem:[%s1876_s5 + $0x28] sm:$0xff]  }
 0x301   :  { %1297 = vmatprep.subr.bf16.mxu0 %v1505_v29 }
 0x302   :  { %1364 = vmatprep.subr.bf16.mxu1 %v472_v33 }
 0x303   :  { %1365 = vmatpush3.bf16.msra.mxu1 %v472_v33  ;;  %v1509_v33 = vld [vmem:[%s1876_s5 + $0x70] sm:$0xff]  }
 0x304   :  { %1366 = vmatprep.subr.bf16.mxu1 %v473_v31  ;;  %1298 = vmatpush3.bf16.msra.mxu0 %v1506_v30 }
 0x307   :  { %1367 = vmatpush3.bf16.msra.mxu1 %v473_v31  ;;  %v1507_v31 = vld [vmem:[%s1876_s5 + $0x68] sm:$0xff]  }
 0x308   :  { %1376 = vmatprep.subr.bf16.mxu1 %v1632_v41  ;;  %1299 = vmatprep.subr.bf16.mxu0 %v1507_v31 }
 0x309   :  { %1300 = vmatpush3.bf16.msra.mxu0 %v1508_v32 }
 0x30a   :  { %1369 = vmatmul.mubr.msk.bf16.vlgmr.msra.gmra.mrb[8].mxu1 %vm251_vm1, %v1756_v35  ;;  %1301 = vmatprep.subr.bf16.mxu0 %v1509_v33 }
 0x30b   :  { %1372 = vmatprep.mubr.msk.bf16.mxu1 %vm251_vm1, %v1758_v36 }
 0x312   :  { %1373 = vmatmul.mubr.msk.bf16.gmra.mrb[12].mxu1 %vm251_vm1, %v1764_v37 }
 0x313   :  { %1384 = vmatprep.mubr.msk.bf16.mxu1 %vm1633_vm2, %v1632_v41 }
 0x314   :  { %v710_v34 = vpop.f32.mrb[28].mxu0 }
 0x315   :  { %v1406_v38 = vpop.f32.mrb[29].mxu0  ;;  %v711_v5 = vadd.f32 %v1191_v3, %v710_v34  ;;  %v1510_v34 = vld [vmem:[%s1876_s5 + $0x30] sm:$0xff]  }
 0x316   :  { %v713_v39 = vpop.f32.mrb[30].mxu0  ;;  %v1511_v38 = vld [vmem:[%s1876_s5 + $0x78] sm:$0xff]   ;;  %1302 = vmatpush3.bf16.msra.mxu0 %v1510_v34 }
 0x317   :  { %v1407_v40 = vpop.f32.mrb[31].mxu0  ;;  %v716_v7 = vmax.f32 %v711_v5, 0.0  ;;  %1303 = vmatprep.subr.bf16.mxu0 %v1511_v38  ;;  %v1512_v39 = vld [vmem:[%s1876_s5 + $0x38] sm:$0xff]  }
 0x318   :  { %v1513_v40 = vld [vmem:[#allocation6 + $0xc0] sm:$0xff]  }
 0x319   :  { %v717_v8 = vpack.c.bf16 %v716_v7, %v716_v7 }
 0x31a   :  { %1304 = vmatpush3.bf16.msra.mxu0 %v1512_v39 }
 0x3dd   :  { %v1370_v42 = vpop.f32.mrb[8].mxu1 }
 0x3de   :  { %v513_v44 = vpop.f32.mrb[9].mxu1  ;;  %v522_v46 = vadd.f32 %v1370_v42, %v1184_v43  ;;  %v1514_v42 = vld [vmem:[#allocation6 + $0xc8] sm:$0xff]  }
 0x3df   :  { %v1371_v45 = vpop.f32.mrb[10].mxu1  ;;  %v514_v48 = vadd.f32 %v1184_v43, %v513_v44  ;;  %v1516_v44 = vld [vmem:[#allocation6 + $0xd8] sm:$0xff]  }
 0x3e0   :  { %v525_v47 = vadd.f32 %v1371_v45, %v1184_v43  ;;  %v516_v35 = vpop.f32.mrb[11].mxu1  ;;  %v1517_v45 = vld [vmem:[#allocation6 + $0xe0] sm:$0xff]  }
 0x3e1   :  { %v517_v49 = vadd.f32 %v1184_v43, %v516_v35 }
 0x3e2   :  { %v546_v36 = vpack.c.bf16 %v525_v47, %v522_v46  ;;  %v1518_v46 = vld [vmem:[#allocation6 + $0xe8] sm:$0xff]  }
 0x3e3   :  { %v545_v50 = vpack.c.bf16 %v517_v49, %v514_v48 }
 0x3e5   :  { %v1374_v51 = vpop.f32.mrb[12].mxu1  ;;  %1377 = vmatpush3.bf16.msra.mxu1 %v545_v50 }
 0x3e6   :  { %v529_v37 = vpop.f32.mrb[13].mxu1  ;;  %1378 = vmatprep.subr.bf16.mxu1 %v1632_v41  ;;  %v538_v53 = vadd.f32 %v1374_v51, %v1184_v43 }
 0x3e7   :  { %v1375_v52 = vpop.f32.mrb[14].mxu1  ;;  %v530_v56 = vadd.f32 %v1184_v43, %v529_v37 }
 0x3e8   :  { %v541_v54 = vadd.f32 %v1375_v52, %v1184_v43  ;;  %v532_v55 = vpop.f32.mrb[15].mxu1 }
 0x3e9   :  { %v533_v57 = vadd.f32 %v1184_v43, %v532_v55  ;;  %1379 = vmatpush3.bf16.msra.mxu1 %v546_v36  ;;  %v1515_v43 = vld [vmem:[#allocation6 + $0xd0] sm:$0xff]   ;;  %v1520_v55 = vld [vmem:[#allocation6 + $0xf8] sm:$0xff]  }
 0x3ea   :  { %v548_v58 = vpack.c.bf16 %v541_v54, %v538_v53  ;;  %1380 = vmatprep.subr.bf16.mxu1 %v1632_v41  ;;  %v1519_v54 = vld [vmem:[#allocation6 + $0xf0] sm:$0xff]  }
 0x3eb   :  { %v547_v59 = vpack.c.bf16 %v533_v57, %v530_v56  ;;  %v1209_v57 = vld [vmem:[#allocation7 + $0x5] ss:$0 sm:$0xff] }
 0x3ed   :  { %1381 = vmatpush3.bf16.msra.mxu1 %v547_v59 }
 0x3ee   :  { %1382 = vmatprep.subr.bf16.mxu1 %v1632_v41 }
 0x3f1   :  { %1383 = vmatpush3.bf16.msra.mxu1 %v548_v58 }
 0x3f2   :  { %1408 = vmatprep.subr.bf16.mxu1 %v1632_v41 }
 0x3f4   :  { %1385 = vmatmul.mubr.msk.bf16.vlgmr.msra.gmra.mrb[16].mxu1 %vm251_vm1, %v544_v60 }
 0x3f5   :  { %1409 = vmatpush3.bf16.msra.mxu1 %v1489_v61  ;;  %1424 = vmatprep.mubr.msk.bf16.mxu1 %vm1633_vm2, %v1632_v41 }
 0x3f6   :  { %1410 = vmatprep.subr.bf16.mxu1 %v1632_v41 }
 0x3f9   :  { %1411 = vmatpush3.bf16.msra.mxu1 %v1490_v62 }
 0x3fa   :  { %1412 = vmatprep.subr.bf16.mxu1 %v1632_v41 }
 0x3fd   :  { %1413 = vmatpush3.bf16.msra.mxu1 %v1491_v63 }
 0x3fe   :  { %1414 = vmatprep.subr.bf16.mxu1 %v1632_v41 }
 0x401   :  { %1415 = vmatpush3.bf16.msra.mxu1 %v1492_v0 }
 0x402   :  { %1416 = vmatprep.subr.bf16.mxu1 %v1632_v41 }
 0x405   :  { %1417 = vmatpush3.bf16.msra.mxu1 %v1493_v1  ;;  %v1226_v1 = vld [vmem:[#allocation7 + $0x6] ss:$0 sm:$0xff] }
 0x406   :  { %1418 = vmatprep.subr.bf16.mxu1 %v1632_v41 }
 0x409   :  { %1419 = vmatpush3.bf16.msra.mxu1 %v1494_v2 }
 0x40a   :  { %1420 = vmatprep.subr.bf16.mxu1 %v1632_v41 }
 0x40d   :  { %1421 = vmatpush3.bf16.msra.mxu1 %v1495_v4 }
 0x40e   :  { %1422 = vmatprep.subr.bf16.mxu1 %v1632_v41 }
 0x411   :  { %1423 = vmatpush3.bf16.msra.mxu1 %v1496_v6  ;;  %v1235_v6 = vld [vmem:[#allocation7 + $0x7] ss:$0 sm:$0xff] }
 0x412   :  { %1428 = vmatprep.subr.bf16.mxu1 %v1632_v41 }
 0x414   :  { %1425 = vmatmul.mubr.bf16.vlgmr.msra.gmra.mrb[20].mxu1 %v717_v8 }
 0x415   :  { %1444 = vmatprep.mubr.msk.bf16.mxu1 %vm1633_vm2, %v1632_v41  ;;  %1429 = vmatpush3.bf16.msra.mxu1 %v1513_v40 }
 0x416   :  { %1430 = vmatprep.subr.bf16.mxu1 %v1632_v41 }
 0x419   :  { %1431 = vmatpush3.bf16.msra.mxu1 %v1514_v42 }
 0x41a   :  { %1432 = vmatprep.subr.bf16.mxu1 %v1632_v41 }
 0x41d   :  { %1433 = vmatpush3.bf16.msra.mxu1 %v1515_v43 }
 0x41e   :  { %1434 = vmatprep.subr.bf16.mxu1 %v1632_v41 }
 0x421   :  { %1435 = vmatpush3.bf16.msra.mxu1 %v1516_v44 }
 0x422   :  { %1436 = vmatprep.subr.bf16.mxu1 %v1632_v41 }
 0x425   :  { %1437 = vmatpush3.bf16.msra.mxu1 %v1517_v45 }
 0x426   :  { %1438 = vmatprep.subr.bf16.mxu1 %v1632_v41 }
 0x429   :  { %1439 = vmatpush3.bf16.msra.mxu1 %v1518_v46 }
 0x42a   :  { %1440 = vmatprep.subr.bf16.mxu1 %v1632_v41 }
 0x42d   :  { %1441 = vmatpush3.bf16.msra.mxu1 %v1519_v54 }
 0x42e   :  { %1442 = vmatprep.subr.bf16.mxu1 %v1632_v41 }
 0x431   :  { %1443 = vmatpush3.bf16.msra.mxu1 %v1520_v55 }
 0x4c7   :  { %v1826_v15 = vpop.f32.mrb[16].mxu1 }
 0x4c8   :  { %v1386_v16 = vpop.f32.mrb[17].mxu1  ;;  %v592_v26 = vmul.f32 %v1826_v15, %v1826_v15 }
 0x4c9   :  { %v589_v17 = vpop.f32.mrb[18].mxu1 }
 0x4ca   :  { %v1387_v18 = vpop.f32.mrb[19].mxu1 }
 0x4e7   :  { %v822_v20 = vpop.f32.mrb[20].mxu1 }
 0x4e8   :  { %v823_v21 = vadd.f32 %v1200_v19, %v822_v20  ;;  %v1426_v22 = vpop.f32.mrb[21].mxu1 }
 0x4e9   :  { %v825_v23 = vpop.f32.mrb[22].mxu1 }
 0x4ea   :  { %v1427_v24 = vpop.f32.mrb[23].mxu1  ;;  %v828_v25 = vmul.f32 %v823_v21, %v823_v21 }
 0x4ec   :  { %829 = vadd.xlane.f32.xlu0 %v828_v25 }
 0x4f0   :  { %593 = vadd.xlane.f32.xlu0 %v592_v26 }
 0x579   :  { %v830_v47 = vpop.xlane.xlu0 %829 }
 0x57a   :  { %v831_v35 = vmax.f32 %v830_v47, 1e-24 }
 0x57c   :  { %1521 = vrsqrt.f32 %v831_v35 }
 0x57d   :  { %v594_v48 = vpop.xlane.xlu0 %593 }
 0x57e   :  { %v595_v49 = vmax.f32 %v594_v48, 1e-24 }
 0x580   :  { %1523 = vrsqrt.f32 %v595_v49 }
 0x586   :  { %v1522_v36 = vpop.eup %1521 }
 0x587   :  { %v833_v50 = vmul.f32 %v1522_v36, %v823_v21 }
 0x589   :  { %v835_v51 = vpack.c.bf16 %v833_v50, %v833_v50 }
 0x58a   :  { %v1524_v37 = vpop.eup %1523 }
 0x58b   :  { %1001 = vmatprep.mubr.bf16.mxu0 %v835_v51  ;;  %v597_v52 = vmul.f32 %v1524_v37, %v1826_v15 }
 0x58d   :  { %v834_v53 = vpack.c.bf16 %v597_v52, %v597_v52 }
 0x58f   :  { %1002 = vmatmul.mubr.bf16.vlgmr.msra.gmra.mrb[32].mxu0 %v834_v53 }
 0x662   :  { %v1305_v56 = vpop.f32.mrb[32].mxu0 }
 0x663   :  { %v1306_v58 = vpop.f32.mrb[33].mxu0 }
 0x664   :  { %v1307_v59 = vadd.f32 %v1306_v58, %v1305_v56  ;;  %v1308_v60 = vpop.f32.mrb[34].mxu0 }
 0x665   :  { %v1309_v61 = vpop.f32.mrb[35].mxu0 }
 0x666   :  { %v1004_v62 = vadd.f32 %v1307_v59, %v1209_v57 }
 0x668   :  { %v1009_v63 = vmax.f32 %v1004_v62, 0.0 }
 0x66a   :  { %v1010_v0 = vpack.c.bf16 %v1009_v63, %v1009_v63 }
 0x66c   :  { %1445 = vmatmul.mubr.bf16.vlgmr.msra.gmra.mrb[24].mxu1 %v1010_v0 }
 0x73f   :  { %v1115_v2 = vpop.f32.mrb[24].mxu1 }
 0x740   :  { %v1116_v3 = vadd.f32 %v1226_v1, %v1115_v2  ;;  %v1446_v4 = vpop.f32.mrb[25].mxu1 }
 0x741   :  { %v1118_v5 = vpop.f32.mrb[26].mxu1 }
 0x742   :  { %v1121_v7 = vmax.f32 %v1116_v3, 0.0  ;;  %v1447_v41 = vpop.f32.mrb[27].mxu1 }
 0x744   :  { %v1127_v8 = vmul.f32 %v1235_v6, %v1121_v7 }
 0x746   :  { %1128 = vadd.xlane.f32.xlu1 %v1127_v8 }
 0x7d3   :  { %v1129_v10 = vpop.xlane.xlu1 %1128 }
 0x7d4   :  { %v1135_v11 = vadd.f32 %v1236_v9, %v1129_v10 }
 0x7d6   :  { %v1237_v12 = vmul.f32 -1.442695, %v1135_v11 }
 0x7d8   :  { %1525 = vpow2.f32 %v1237_v12 }
 0x7e2   :  { %v1526_v13 = vpop.eup %1525 }
 0x7e3   :  { %v1139_v14 = vadd.f32 1.0, %v1526_v13 }
 0x7e5   :  { %1527 = vrcp.f32 %v1139_v14 }
 0x7ef   :  { %v1528_v15 = vpop.eup %1527 }
 0x7f0   :  { %1144 = vperm.xlu1 %1459, %v1528_v15  }
 0x86f   :  { %v1145_v16 = vpop.permute.xlu1 %1144 }
 0x870   :  { %1147 = vst [vmem:[%s1878_s7] sm:$0xff] %v1145_v16 }
 0x871   :  { %1152 = vsyncpa [#allocation3], 1 }
 0x872   :  { %1153 = vsyncpa [#allocation5], 1 }
 0x873   :  { %1154 = vsyncpa [#allocation8], 1 }

</bundles_post_ra>
